<compile_context>
chip_gen: v7x
topology: tpu7x:2x2x1
jax: 0.10.0
libtpu: 0.0.40
codegen_flags: <defaults>
</compile_context>

<pallas_src>
import jax
import jax.numpy as jnp
from jax import lax
from jax.experimental import pallas as pl
from jax.experimental.pallas import tpu as pltpu


_LANE = 128
_TARGET_X_TILE_BYTES = 2 * 1024 * 1024   # lane-padded VMEM bytes of x per grid step
_VMEM_LIMIT_BYTES = 32 * 1024 * 1024     # within scoped defaults / physical VMEM on v5e/v6e/v7x


def _round_up(x, m):
    return ((x + m - 1) // m) * m


def _sublane(itemsize):
    # f32 -> 8, bf16 -> 16, int8/fp8 -> 32 (sub-32-bit packs along sublanes).
    return 8 * max(1, 4 // itemsize)


def _make_kernel(seq_valid, batch_valid):
    def kernel(x_ref, w_ref, u_ref, o_ref):
        TB, S_pad, H2 = x_ref.shape
        A = w_ref.shape[1]

        x = x_ref[...]                                    # native dtype (f32 or bf16)
        w = w_ref[...]
        u = u_ref[...].astype(jnp.float32)                # (1, A)

        # Single lane/sublane-aligned 2D matmul on the MXU, f32 accumulation.
        # The reshape only merges the leading dims (S_pad is a sublane multiple),
        # so it is layout-free.
        x2 = x.reshape(TB * S_pad, H2)
        t = jnp.tanh(jnp.dot(x2, w, preferred_element_type=jnp.float32))   # (TB*S_pad, A)

        # A -> 1 score contraction on VPU (broadcast mul) + XLU (lane reduce);
        # keep S on the sublane axis through the whole softmax: (TB, S_pad, 1).
        t3 = t.reshape(TB, S_pad, A)
        score = jnp.sum(t3 * u, axis=-1, keepdims=True)   # (TB, S_pad, 1)

        # exp with no max subtraction, matching the PyTorch reference exactly.
        e = jnp.exp(score)

        if seq_valid != S_pad:
            # Mask wrapper-padded sequence positions out of the softmax.
            sidx = lax.broadcasted_iota(jnp.int32, (1, S_pad, 1), 1)
            e = jnp.where(sidx < seq_valid, e, 0.0)
        if batch_valid % TB != 0:
            # Ragged last batch block: zero the softmax weights of the garbage
            # rows (their output rows are dropped by Pallas anyway; this keeps
            # the junk explicitly contained).
            ridx = pl.program_id(0) * TB + lax.broadcasted_iota(jnp.int32, (TB, 1, 1), 0)
            e = jnp.where(ridx < batch_valid, e, 0.0)

        denom = jnp.sum(e, axis=1, keepdims=True)         # (TB, 1, 1)
        alphas = e / denom                                # (TB, S_pad, 1)

        # Weighted sum over the sequence: lane-broadcast multiply + sublane reduce.
        out = jnp.sum(x * alphas, axis=1)                 # (TB, H2), f32
        o_ref[...] = out.astype(o_ref.dtype)

    return kernel


def self_attention_net_pallas(lstm_output, w_omega, u_omega, max_sen):
    """lstm_output: (B, S, 2H), w_omega: (2H, A), u_omega: (A,) -> (B, 2H)."""
    B, S, H2 = lstm_output.shape
    assert S == max_sen
    A = w_omega.shape[1]
    dtype = lstm_output.dtype
    itemsize = jnp.dtype(dtype).itemsize
    u_row = u_omega.reshape(1, A)

    # Pad the sequence axis once (only when max_sen is not sublane-aligned) so
    # the in-kernel (TB, S, 2H) <-> (TB*S, 2H) reshapes are layout-free; the
    # padded positions are masked out of the softmax inside the kernel.
    sub = _sublane(itemsize)
    S_pad = _round_up(S, sub)
    if S_pad != S:
        pad = jnp.zeros((B, S_pad - S, H2), dtype=dtype)
        x_in = jnp.concatenate([lstm_output, pad], axis=1)
    else:
        x_in = lstm_output

    # Batch-chunk size TB. The kernel is HBM-bandwidth bound (~8 flops/byte),
    # so size the x tile by VMEM/DMA budget (~2 MiB lane-padded per step), as a
    # multiple of 8 sublanes, and cap it so large batches always yield >= 2
    # grid chunks (the single "parallel" axis can then shard across both
    # TensorCores on v7x).
    bytes_per_batch_row = S_pad * _round_up(H2, _LANE) * itemsize
    tb_budget = max(8, (_TARGET_X_TILE_BYTES // bytes_per_batch_row) // 8 * 8)
    tb_megacore = _round_up(pl.cdiv(B, 2), 8)
    TB = min(tb_budget, tb_megacore, B)
    # No batch-padding copy: grid = cdiv(B, TB); the ragged last block is
    # masked in-kernel and its out-of-bounds output rows are dropped.
    n_chunks = pl.cdiv(B, TB)

    flops = 2 * B * S * H2 * A + 2 * B * S * A + 2 * B * S * H2
    transcendentals = B * S * (A + 1)
    bytes_accessed = (B * S_pad * H2 + H2 * A + A + B * H2) * itemsize
    cost = pl.CostEstimate(flops=flops, transcendentals=transcendentals,
                           bytes_accessed=bytes_accessed)

    return pl.pallas_call(
        _make_kernel(S, B),
        out_shape=jax.ShapeDtypeStruct((B, H2), dtype),
        grid_spec=pltpu.PrefetchScalarGridSpec(
            num_scalar_prefetch=0,
            grid=(n_chunks,),
            in_specs=[
                pl.BlockSpec((TB, S_pad, H2), lambda b: (b, 0, 0)),  # x chunk
                pl.BlockSpec((H2, A), lambda b: (0, 0)),             # w_omega (shared)
                pl.BlockSpec((1, A), lambda b: (0, 0)),              # u_omega row (shared)
            ],
            out_specs=pl.BlockSpec((TB, H2), lambda b: (b, 0)),      # lane-dense slab
        ),
        compiler_params=pltpu.CompilerParams(
            dimension_semantics=("parallel",),
            vmem_limit_bytes=_VMEM_LIMIT_BYTES),
        cost_estimate=cost,
    )(x_in, w_omega, u_row)


def self_attention_net_ref(lstm_output, w_omega, u_omega, max_sen):
    """Pure-JAX reference mirroring the PyTorch forward exactly."""
    B, S, H2 = lstm_output.shape
    x2 = lstm_output.reshape(-1, H2)
    attn_tanh = jnp.tanh(x2 @ w_omega)
    attn_hidden = attn_tanh @ u_omega.reshape(-1, 1)
    exps = jnp.exp(attn_hidden).reshape(-1, max_sen)
    alphas = exps / jnp.sum(exps, axis=1).reshape(-1, 1)
    alphas_r = alphas.reshape(-1, max_sen, 1)
    return jnp.sum(lstm_output * alphas_r, axis=1)


if __name__ == "__main__":
    # Shapes consistent with the module:
    #   label_hidden_size = 32 -> feature dim 2H = 64
    #   max_sen (seq len)  = 8
    #   atten_size         = 16
    batch, hidden, max_sen, atten = 2, 32, 8, 16
    H2 = hidden * 2

    key = jax.random.PRNGKey(0)
    kx, kw, ku = jax.random.split(key, 3)
    # Module's __init__ uses zero weights; random values are used here so the
    # softmax / weighted-sum path is exercised non-trivially.
    lstm_output = jax.random.normal(kx, (batch, max_sen, H2), dtype=jnp.float32)
    w_omega = 0.1 * jax.random.normal(kw, (H2, atten), dtype=jnp.float32)
    u_omega = 0.1 * jax.random.normal(ku, (atten,), dtype=jnp.float32)

    out = self_attention_net_pallas(lstm_output, w_omega, u_omega, max_sen)
    out = jax.block_until_ready(out)
    ref = self_attention_net_ref(lstm_output, w_omega, u_omega, max_sen)
    assert out.shape == (batch, H2)
    assert jnp.allclose(out, ref, atol=1e-5, rtol=1e-5)

    # Ragged batch: B=40 -> TB=24, 2 grid steps, last block has 16 valid rows
    # (exercises the no-copy ragged path + in-kernel batch mask).
    big_b = 40
    lstm_big = jax.random.normal(jax.random.PRNGKey(1), (big_b, max_sen, H2), dtype=jnp.float32)
    out_big = jax.block_until_ready(
        self_attention_net_pallas(lstm_big, w_omega, u_omega, max_sen))
    ref_big = self_attention_net_ref(lstm_big, w_omega, u_omega, max_sen)
    assert out_big.shape == (big_b, H2)
    assert jnp.allclose(out_big, ref_big, atol=1e-5, rtol=1e-5)

    # Large batch: B=2048 -> TB hits the VMEM budget (512 rows/step), 4 chunks.
    huge_b = 2048
    lstm_huge = jax.random.normal(jax.random.PRNGKey(2), (huge_b, max_sen, H2), dtype=jnp.float32)
    out_huge = jax.block_until_ready(
        self_attention_net_pallas(lstm_huge, w_omega, u_omega, max_sen))
    ref_huge = self_attention_net_ref(lstm_huge, w_omega, u_omega, max_sen)
    assert out_huge.shape == (huge_b, H2)
    assert jnp.allclose(out_huge, ref_huge, atol=1e-5, rtol=1e-5)

    # Unaligned max_sen: S=6 -> padded to 8 in the wrapper, masked in-kernel.
    odd_s, odd_b = 6, 5
    lstm_odd = jax.random.normal(jax.random.PRNGKey(3), (odd_b, odd_s, H2), dtype=jnp.float32)
    out_odd = jax.block_until_ready(
        self_attention_net_pallas(lstm_odd, w_omega, u_omega, odd_s))
    ref_odd = self_attention_net_ref(lstm_odd, w_omega, u_omega, odd_s)
    assert out_odd.shape == (odd_b, H2)
    assert jnp.allclose(out_odd, ref_odd, atol=1e-5, rtol=1e-5)

    print("KERNEL_OK")
</pallas_src>

<mosaic_0001>
module attributes {stable_mosaic.version = 11 : i64} {
  func.func @kernel(%arg0: i32, %arg1: memref<2x8x64xf32, #tpu.memory_space<vmem>>, %arg2: memref<64x16xf32, #tpu.memory_space<vmem>>, %arg3: memref<1x16xf32, #tpu.memory_space<vmem>>, %arg4: memref<2x64xf32, #tpu.memory_space<vmem>>) attributes {dimension_semantics = [#tpu.dimension_semantics<parallel>], iteration_bounds = array<i64: 1>, scalar_prefetch = 0 : i64, scratch_operands = 0 : i64, tpu.core_type = #tpu.core_type<tc>, window_params = [{transform_indices = @transform_0, window_bounds = array<i64: 2, 8, 64>}, {pipeline_mode = #tpu.pipeline_mode<synchronous>, transform_indices = @transform_1, window_bounds = array<i64: 64, 16>}, {pipeline_mode = #tpu.pipeline_mode<synchronous>, transform_indices = @transform_2, window_bounds = array<i64: 1, 16>}, {transform_indices = @transform_3, window_bounds = array<i64: 2, 64>}]} {
    %c0 = arith.constant 0 : index
    %c0_0 = arith.constant 0 : index
    %c0_1 = arith.constant 0 : index
    %0 = vector.load %arg1[%c0, %c0_0, %c0_1] : memref<2x8x64xf32, #tpu.memory_space<vmem>>, vector<2x8x64xf32>
    %c0_2 = arith.constant 0 : index
    %c0_3 = arith.constant 0 : index
    %1 = vector.load %arg2[%c0_2, %c0_3] : memref<64x16xf32, #tpu.memory_space<vmem>>, vector<64x16xf32>
    %c0_4 = arith.constant 0 : index
    %c0_5 = arith.constant 0 : index
    %2 = vector.load %arg3[%c0_4, %c0_5] : memref<1x16xf32, #tpu.memory_space<vmem>>, vector<1x16xf32>
    %3 = vector.shape_cast %0 : vector<2x8x64xf32> to vector<16x64xf32>
    %cst = arith.constant dense<0.000000e+00> : vector<16x16xf32>
    %4 = tpu.matmul %3, %1, %cst {dimension_numbers = #tpu.dot_dimension_numbers<[1], [0], [0], [1], [0, 0, 1, 1], [], []>} : vector<16x64xf32>, vector<64x16xf32>, vector<16x16xf32> -> vector<16x16xf32>
    %5 = math.tanh %4 : vector<16x16xf32>
    %6 = vector.shape_cast %5 : vector<16x16xf32> to vector<2x8x16xf32>
    %7 = vector.shape_cast %2 : vector<1x16xf32> to vector<1x1x16xf32>
    %8 = vector.broadcast %7 : vector<1x1x16xf32> to vector<2x8x16xf32>
    %9 = arith.mulf %6, %8 : vector<2x8x16xf32>
    %cst_6 = arith.constant dense<0.000000e+00> : vector<2x8xf32>
    %10 = vector.multi_reduction <add>, %9, %cst_6 [2] : vector<2x8x16xf32> to vector<2x8xf32>
    %11 = vector.shape_cast %10 : vector<2x8xf32> to vector<2x8x1xf32>
    %12 = math.exp %11 : vector<2x8x1xf32>
    %cst_7 = arith.constant dense<0.000000e+00> : vector<2x1xf32>
    %13 = vector.multi_reduction <add>, %12, %cst_7 [1] : vector<2x8x1xf32> to vector<2x1xf32>
    %14 = vector.shape_cast %13 : vector<2x1xf32> to vector<2x1x1xf32>
    %15 = vector.broadcast %14 : vector<2x1x1xf32> to vector<2x8x1xf32>
    %16 = arith.divf %12, %15 : vector<2x8x1xf32>
    %17 = vector.broadcast %16 : vector<2x8x1xf32> to vector<2x8x64xf32>
    %18 = arith.mulf %0, %17 : vector<2x8x64xf32>
    %cst_8 = arith.constant dense<0.000000e+00> : vector<2x64xf32>
    %19 = vector.multi_reduction <add>, %18, %cst_8 [1] : vector<2x8x64xf32> to vector<2x64xf32>
    %c0_9 = arith.constant 0 : index
    %c0_10 = arith.constant 0 : index
    %20 = vector.load %arg4[%c0_9, %c0_10] : memref<2x64xf32, #tpu.memory_space<vmem>>, vector<2x64xf32>
    tpu.vector_store %arg4[%c0_9, %c0_10], %19 {strides = array<i32>} : memref<2x64xf32, #tpu.memory_space<vmem>>, vector<2x64xf32>,
    return
  }
  func.func @transform_0(%arg0: i32) -> (i32, i32, i32) {
    %c0_i32 = arith.constant 0 : i32
    %c0_i32_0 = arith.constant 0 : i32
    %c0_i32_1 = arith.constant 0 : i32
    return %arg0, %c0_i32, %c0_i32_0 : i32, i32, i32
  }
  func.func @transform_1(%arg0: i32) -> (i32, i32) {
    %c0_i32 = arith.constant 0 : i32
    %c0_i32_0 = arith.constant 0 : i32
    %c0_i32_1 = arith.constant 0 : i32
    return %c0_i32, %c0_i32_0 : i32, i32
  }
  func.func @transform_2(%arg0: i32) -> (i32, i32) {
    %c0_i32 = arith.constant 0 : i32
    %c0_i32_0 = arith.constant 0 : i32
    %c0_i32_1 = arith.constant 0 : i32
    return %c0_i32, %c0_i32_0 : i32, i32
  }
  func.func @transform_3(%arg0: i32) -> (i32, i32) {
    %c0_i32 = arith.constant 0 : i32
    %c0_i32_0 = arith.constant 0 : i32
    return %arg0, %c0_i32 : i32, i32
  }
}

</mosaic_0001>

<bundles_post_ra>
// kernel: tpu_custom_call.1
= control target key start
LH: loop header
LB: loop body
LE: loop exit
PB: predicated region body
PF: predicated region fallthrough
CT: control target
= control target key end

     0   :  { %vm26_vm0 = vcmask 523264   ;;  %s337_s0 = inlined_call_operand.vmem [shape: f32[2,8,64], index: 0, kind: input, shape index: {}]   ;;  %s338_s1 = inlined_call_operand.vmem [shape: f32[64,16], index: 1, kind: input, shape index: {}]   ;;  %s339_s2 = inlined_call_operand.vmem [shape: f32[1,16], index: 2, kind: input, shape index: {}]   ;;  %s340_s3 = inlined_call_operand.hbm [shape: f32[2,64], index: 3, kind: output, shape index: {}]  }
   0x1   :  { %v17_v0 = vld [vmem:[%s338_s1] sm:$0xff]  ;;  %v18_v1 = vld [vmem:[%s338_s1 + $0x8] sm:$0xff]  ;;  %v19_v2 = vld [vmem:[%s338_s1 + $0x10] sm:$0xff] }
   0x2   :  { %v214_v3 = vpack.c.bf16 %v18_v1, %v17_v0  ;;  %v20_v4 = vld [vmem:[%s338_s1 + $0x18] sm:$0xff]  ;;  %v21_v6 = vld [vmem:[%s338_s1 + $0x20] sm:$0xff]  ;;  %v22_v7 = vld [vmem:[%s338_s1 + $0x28] sm:$0xff] }
   0x3   :  { %v218_v5 = vpack.c.bf16 %v20_v4, %v19_v2  ;;  %v15_v8 = vld [vmem:[%s337_s0] sm:$0xff] }
   0x4   :  { %215 = vmatprep.subr.bf16.mxu0 %v214_v3  ;;  %211 = vmatprep.mubr.msk.f32.mxu0 %vm26_vm0, %v15_v8 }
   0x5   :  { %8 = vsyncpa [#allocation3], 0  ;;  %217 = vmatpush3.bf16.msra.mxu0 %v214_v3  ;;  %v222_v9 = vpack.c.bf16 %v22_v7, %v21_v6  ;;  %v23_v10 = vld [vmem:[%s338_s1 + $0x30] sm:$0xff]  ;;  %v24_v11 = vld [vmem:[%s338_s1 + $0x38] sm:$0xff]  ;;  %vm118_vm1 = vcmask 130048   ;;  %vm163_vm2 = vcmask 1041409  }
   0x6   :  { %219 = vmatprep.subr.bf16.mxu0 %v218_v5  ;;  %v226_v12 = vpack.c.bf16 %v24_v11, %v23_v10  ;;  %v16_v13 = vld [vmem:[%s337_s0 + $0x8] sm:$0xff]  ;;  %v184_v16 = vld [vmem:[%s339_s2] ss:$0 sm:$0xff]  ;;  %s267_s0 = smov [#allocation2]   ;;  %vm166_vm3 = vcmask 517120  }
   0x7   :  { %s174_s1 = sshll.u32 %s267_s0, 4  ;;  %s175_s1 = int_to_ptr.vmem [resolvable:$true] %s174_s1 }
   0x8   :  { %s243_s2 = scalar_lea.vmem %s175_s1, 32  ;;  %p248_p1 = scmp.lt.s32.totalorder %s175_s1, %s175_s1 }
   0x9   :  { %221 = vmatpush3.bf16.msra.mxu0 %v218_v5  ;;  %p244_p0 = scmp.ne.s32.totalorder %s175_s1, %s243_s2  ;;  %p249_p2 = scmp.lt.s32.totalorder %s243_s2, %s243_s2 }
   0xa   :  { %223 = vmatprep.subr.bf16.mxu0 %v222_v9 }
   0xb   :  { %p250_p3 = por %p249_p2, %p248_p1 }
   0xd   :  { %225 = vmatpush3.bf16.msra.mxu0 %v222_v9  ;;  %p251_p4 = pnand %p250_p3, %p244_p0 }
   0xe   :  { %227 = vmatprep.subr.bf16.mxu0 %v226_v12 }
  0x11   :  { %229 = vmatpush3.bf16.msra.mxu0 %v226_v12 }
  0x14   :  { %212 = vmatmul.mubr.msk.f32.vlgmr.msra.gmra.mrb[0].mxu0 %vm26_vm0, %v16_v13 }
  0xe7   :  { %v213_v14 = vpop.f32.mrb[0].mxu0 }
  0xe8   :  { %231 = vtanh.f32 %v213_v14  ;;  %v99_v15 = vpop.f32.mrb[1].mxu0 }
  0xe9   :  { %233 = vtanh.f32 %v99_v15 }
  0xf2   :  { %v232_v17 = vpop.eup %231 }
  0xf3   :  { %v234_v18 = vpop.eup %233  ;;  %v117_v21 = vmul.f32 %v232_v17, %v184_v16 }
  0xf4   :  { %v116_v19 = vmul.f32 %v234_v18, %v184_v16 }
  0xf5   :  { %v122_v22 = vsel %vm118_vm1, %v117_v21, 0.0 }
  0xf6   :  { %v119_v20 = vsel %vm118_vm1, %v116_v19, 0.0 }
  0xf7   :  { %120 = vadd.xlane.f32.xlu0 %v119_v20 }
  0xfb   :  { %123 = vadd.xlane.f32.xlu0 %v122_v22 }
 0x184   :  { %v121_v23 = vpop.xlane.xlu0 %120 }
 0x185   :  { %v125_v24 = vmul.f32 1.442695, %v121_v23 }
 0x187   :  { %235 = vpow2.f32 %v125_v24 }
 0x188   :  { %v124_v25 = vpop.xlane.xlu0 %123 }
 0x189   :  { %v127_v26 = vmul.f32 1.442695, %v124_v25 }
 0x18b   :  { %237 = vpow2.f32 %v127_v26 }
 0x191   :  { %v236_v27 = vpop.eup %235 }
 0x192   :  { %v129_v28 = vrot.slane %v236_v27, 4 }
 0x194   :  { %v130_v29 = vadd.f32 %v236_v27, %v129_v28 }
 0x195   :  { %v238_v30 = vpop.eup %237 }
 0x196   :  { %v131_v31 = vrot.slane %v130_v29, 2  ;;  %v135_v32 = vrot.slane %v238_v30, 4 }
 0x198   :  { %v132_v33 = vadd.f32 %v131_v31, %v130_v29  ;;  %v136_v34 = vadd.f32 %v238_v30, %v135_v32 }
 0x19a   :  { %v137_v35 = vrot.slane %v136_v34, 2  ;;  %v133_v36 = vrot.slane %v132_v33, 1 }
 0x19c   :  { %v138_v37 = vadd.f32 %v137_v35, %v136_v34  ;;  %v134_v38 = vadd.f32 %v133_v36, %v132_v33 }
 0x19e   :  { %v139_v39 = vrot.slane %v138_v37, 1  ;;  %239 = vrcp.f32 %v134_v38 }
 0x1a0   :  { %v140_v40 = vadd.f32 %v139_v39, %v138_v37 }
 0x1a2   :  { %241 = vrcp.f32 %v140_v40 }
 0x1a8   :  { %v240_v41 = vpop.eup %239 }
 0x1a9   :  { %v142_v42 = vmul.f32 %v240_v41, %v236_v27 }
 0x1ab   :  { %v145_v43 = vmul.f32 %v142_v42, %v15_v8 }
 0x1ac   :  { %v242_v44 = vpop.eup %241 }
 0x1ad   :  { %v144_v45 = vmul.f32 %v242_v44, %v238_v30  ;;  %v147_v46 = vsel %vm26_vm0, %v145_v43, 0.0 }
 0x1ae   :  { %v148_v47 = vrot.slane %v147_v46, 4 }
 0x1af   :  { %v146_v48 = vmul.f32 %v144_v45, %v16_v13 }
 0x1b0   :  { %v149_v49 = vadd.f32 %v148_v47, %v147_v46 }
 0x1b1   :  { %v154_v50 = vsel %vm26_vm0, %v146_v48, 0.0 }
 0x1b2   :  { %v150_v51 = vrot.slane %v149_v49, 2  ;;  %v155_v52 = vrot.slane %v154_v50, 4 }
 0x1b4   :  { %v151_v53 = vadd.f32 %v150_v51, %v149_v49  ;;  %v156_v54 = vadd.f32 %v155_v52, %v154_v50 }
 0x1b6   :  { %v157_v55 = vrot.slane %v156_v54, 2  ;;  %v152_v56 = vrot.slane %v151_v53, 1 }
 0x1b8   :  { %v158_v57 = vadd.f32 %v157_v55, %v156_v54  ;;  %v153_v59 = vadd.f32 %v152_v56, %v151_v53 }
 0x1ba   :  { %v159_v58 = vrot.slane %v158_v57, 1 }
 0x1bc   :  { %v160_v60 = vadd.f32 %v159_v58, %v158_v57 }
 0x1be   :  { %v164_v61 = vsel %vm163_vm2, %v160_v60, %v153_v59 }
 0x1bf   :  { %167 = vst.msk [vmem:[#allocation2] sm:$0x3] %vm166_vm3, %v164_v61 }
 0x1c0   :  { %254 = shalt.err (!%p251_p4)
}
 0x1c1   :  { %s255_s9 = scalar_lea.hbm %s340_s3, 32 }
 0x1c2   :  { %p256_p5 = scmp.ne.s32.totalorder %s340_s3, %s255_s9  ;;  %p259_p6 = scmp.lt.u32.totalorder %s255_s9, %s340_s3 }
 0x1c4   :  { %p261_p7 = pnand %p259_p6, %p256_p5 }
 0x1c6   :  { %264 = shalt.err (!%p261_p7)
}
 0x1c7   :  { %177 = dma.vmem_to_hbm [thread:$0]  %s175_s1, 32, %s340_s3, [#allocation3]  }
 0x1c8   :  { %265 = dma.done.wait [#allocation3], 32  }
 0x1c9   :  { %266 = vsyncadd [#allocation3], 4294967264 }
 0x1ca   :  { %181 = vsyncpa [#allocation3], 1 }

</bundles_post_ra>
